<compile_context>
chip_gen: v7x
topology: tpu7x:2x2x1
jax: 0.10.0
libtpu: 0.0.40
codegen_flags: <defaults>
</compile_context>

<pallas_src>
import functools

import jax
import jax.numpy as jnp
from jax import lax
from jax.experimental import pallas as pl
from jax.experimental.pallas import tpu as pltpu

_MiB = 1024 * 1024


def _se_fused_kernel(x_ref, w1_ref, w2_ref, o_ref, acc_ref, scale_ref,
                     *, s_total, acc_lanes, reg_carry):
    """Fused pool (phase 0) + MLP + scale-apply (phase 1)."""
    phase = pl.program_id(1)
    tile = pl.program_id(2)
    tile_len = x_ref.shape[-1]          # static
    n_chunks = tile_len // acc_lanes    # static, exact by construction

    @pl.when(jnp.logical_and(phase == 0, tile == 0))
    def _init():
        acc_ref[...] = jnp.zeros_like(acc_ref)

    @pl.when(phase == 0)
    def _pool():
        if n_chunks == 1:
            acc_ref[...] += x_ref[...].astype(jnp.float32)
        elif reg_carry:
            # Register-resident partial sum; single VMEM += per grid step.
            def chunk_add(j, carry):
                off = pl.multiple_of(j * acc_lanes, acc_lanes)
                return carry + x_ref[:, :, pl.ds(off, acc_lanes)].astype(
                    jnp.float32)
            part = lax.fori_loop(0, n_chunks, chunk_add,
                                 jnp.zeros(acc_ref.shape, jnp.float32),
                                 unroll=(n_chunks <= 16))
            acc_ref[...] += part
        else:
            def chunk_add(j, carry):
                off = pl.multiple_of(j * acc_lanes, acc_lanes)
                acc_ref[...] += x_ref[:, :, pl.ds(off, acc_lanes)].astype(
                    jnp.float32)
                return carry
            lax.fori_loop(0, n_chunks, chunk_add, 0, unroll=(n_chunks <= 16))

    @pl.when(jnp.logical_and(phase == 1, tile == 0))
    def _mlp():
        # Single cross-lane reduce of the accumulator, then the bottleneck MLP
        # (microscopic; runs exactly once per batch block).  The relayout to
        # the apply-friendly (bb, C, 1) shape happens here, once, not per tile.
        pooled = jnp.sum(acc_ref[...], axis=-1) * (1.0 / jnp.float32(s_total))
        h = jnp.dot(pooled, w1_ref[...], preferred_element_type=jnp.float32)
        h = jnp.maximum(h, 0.0)
        z = jnp.dot(h, w2_ref[...], preferred_element_type=jnp.float32)
        scale_ref[...] = jax.nn.sigmoid(z)[:, :, None].astype(scale_ref.dtype)

    @pl.when(phase == 1)
    def _apply():
        x = x_ref[...]
        s = scale_ref[...]                      # (bb, C, 1), apply-ready
        if x.dtype == s.dtype:
            o_ref[...] = (x * s).astype(o_ref.dtype)
        else:
            # v5e bf16 path (no bf16 VALU): multiply in f32, downcast once.
            o_ref[...] = (x.astype(jnp.float32) *
                          s.astype(jnp.float32)).astype(o_ref.dtype)


def _tpu_generation():
    """Returns (vmem_budget_bytes, vmem_limit_bytes, is_v7x, bf16_vpu_ok)."""
    vmem_cap = None
    kind = ""
    try:
        vmem_cap = int(pltpu.get_tpu_info().vmem_capacity_bytes)
    except Exception:
        pass
    try:
        kind = jax.devices()[0].device_kind.lower()
    except Exception:
        pass

    is_v7x = ("v7" in kind) or (vmem_cap is not None and vmem_cap <= 80 * _MiB)
    is_v5e = ("v5 lite" in kind) or ("v5e" in kind) or ("v5litepod" in kind)

    if vmem_cap is None and not kind:
        # Unknown hardware: conservative defaults that are safe everywhere.
        budget, limit = 24 * _MiB, 32 * _MiB
    elif is_v7x:
        # 64 MiB physical VMEM per TensorCore: stay well under it.
        budget, limit = 36 * _MiB, 48 * _MiB
    else:
        # v5e / v6e: 128 MiB physical VMEM; scoped default (16/32 MiB) is far
        # too small, so raise it explicitly.
        budget, limit = 64 * _MiB, 100 * _MiB

    if vmem_cap is not None:
        limit = min(limit, max(vmem_cap - 12 * _MiB, 16 * _MiB))
        budget = min(budget, (limit * 3) // 4)

    return budget, limit, is_v7x, (not is_v5e)


def _pick_tile_s(S, bb, C, itemsize, vmem_budget_bytes, max_tile=65536):
    """Largest spatial tile (multiple of 128 dividing S) within the budget."""
    # ~4 resident copies of the (bb, C, tile) block in x.dtype (double-buffered
    # in + out); the f32 accumulator / scale / weights are negligible.
    cap = (vmem_budget_bytes // (4 * bb * C * itemsize)) // 128 * 128
    cap = max(128, min(max_tile, cap))
    if S <= cap:
        return S                       # single resident tile: x read once
    best = 128
    for t in range(256, cap + 1, 128):
        if S % t == 0:
            best = t
    return best


def se_block(x, w1, w2, *, tile_s=None, donate_x=False):
    """x: (B, C, D, H, W).  w1: (hidden, C), w2: (C, hidden) — PyTorch
    nn.Linear weight layout (out_features x in_features, no bias)."""
    B, C, D, H, W = x.shape
    S = D * H * W
    hidden = w1.shape[0]
    assert w1.shape == (hidden, C) and w2.shape == (C, hidden)

    budget, vmem_limit, is_v7x, bf16_vpu_ok = _tpu_generation()

    xr = x.reshape(B, C, S)
    # Pad the spatial axis to a multiple of 128: tiles stay lane-dense and the
    # accumulator stays (bb, C, 128).  Zero padding leaves the sum unchanged;
    # the mean divides by the true S.  Pad region is sliced off after the call.
    S_pad = ((S + 127) // 128) * 128
    if S_pad != S:
        xr = jnp.pad(xr, ((0, 0), (0, 0), (0, S_pad - S)))

    w1_t = jnp.transpose(w1)   # (C, hidden)
    w2_t = jnp.transpose(w2)   # (hidden, C)

    # On v7x, shard the independent batch axis across the two TensorCores.
    shard_batch = is_v7x and B > 1
    nb = B if shard_batch else 1
    bb = B // nb

    itemsize = jnp.dtype(x.dtype).itemsize
    if tile_s is None:
        tile_s = _pick_tile_s(S_pad, bb, C, itemsize, budget)
    assert S_pad % tile_s == 0 and tile_s % 128 == 0, (
        "tile_s must divide the padded S and be a multiple of 128")

    nt = S_pad // tile_s
    acc_lanes = 128
    reg_carry = (bb * C) <= 128        # accumulator fits in <= 16 vregs

    # Scale dtype: match x for the native-bf16 multiply on v6e/v7x; f32
    # otherwise (f32 inputs, or bf16 on v5e which has no bf16 VALU).
    scale_dtype = (x.dtype if (x.dtype == jnp.bfloat16 and bf16_vpu_ok)
                   else jnp.float32)

    kernel = functools.partial(_se_fused_kernel, s_total=S,
                               acc_lanes=acc_lanes, reg_carry=reg_carry)

    x_bytes = B * C * S_pad * itemsize
    cost = pl.CostEstimate(
        flops=3 * B * C * S + 4 * B * C * hidden,
        transcendentals=B * C,
        bytes_accessed=(2 if nt == 1 else 3) * x_bytes,
    )

    out = pl.pallas_call(
        kernel,
        out_shape=jax.ShapeDtypeStruct((B, C, S_pad), x.dtype),
        grid_spec=pltpu.PrefetchScalarGridSpec(
            num_scalar_prefetch=0,
            grid=(nb, 2, nt),   # (batch block, phase, spatial tile)
            in_specs=[
                pl.BlockSpec((bb, C, tile_s), lambda b, p, i: (b, 0, i)),
                pl.BlockSpec((C, hidden), lambda b, p, i: (0, 0)),
                pl.BlockSpec((hidden, C), lambda b, p, i: (0, 0)),
            ],
            # Pin the output block index to tile 0 during phase 0; each output
            # block is written exactly once, in phase 1, so even if Pallas
            # wrote back on every step the last write per block is correct.
            out_specs=pl.BlockSpec((bb, C, tile_s),
                                   lambda b, p, i: (b, 0, i * p)),
            scratch_shapes=[
                pltpu.VMEM((bb, C, acc_lanes), jnp.float32),  # pooled sum acc
                pltpu.VMEM((bb, C, 1), scale_dtype),          # per-(b,C) scale
            ],
        ),
        compiler_params=pltpu.CompilerParams(
            dimension_semantics=("parallel", "arbitrary", "arbitrary"),
            vmem_limit_bytes=vmem_limit,
        ),
        cost_estimate=cost,
        input_output_aliases=({0: 0} if donate_x else {}),
    )(xr, w1_t, w2_t)

    if S_pad != S:
        out = out[:, :, :S]
    return out.reshape(B, C, D, H, W)


def se_block_ref(x, w1, w2):
    """Pure-JAX reference mirroring the PyTorch forward."""
    B, C = x.shape[:2]
    y = x.reshape(B, C, -1).mean(axis=2)           # (B, C)
    y = jnp.maximum(y @ w1.T, 0.0)                 # fc1 + relu
    y = jax.nn.sigmoid(y @ w2.T)                   # fc2 + sigmoid
    return x * y.reshape(B, C, 1, 1, 1)


if __name__ == "__main__":
    # Small, deterministic example consistent with SEBlock(channels=32, reduction=16)
    B, C, D, H, W = 2, 32, 8, 8, 8
    reduction = 16
    hidden = C // reduction

    key = jax.random.PRNGKey(0)
    kx, k1, k2, kx2 = jax.random.split(key, 4)
    x = jax.random.normal(kx, (B, C, D, H, W), dtype=jnp.float32)
    # nn.Linear(channels, channels//reduction, bias=False): weight (hidden, C)
    w1 = jax.random.normal(k1, (hidden, C), dtype=jnp.float32) * 0.1
    # nn.Linear(channels//reduction, channels, bias=False): weight (C, hidden)
    w2 = jax.random.normal(k2, (C, hidden), dtype=jnp.float32) * 0.1

    ref = se_block_ref(x, w1, w2)

    # Default path: auto tile -> whole spatial extent resident (nt == 1),
    # x is read from HBM exactly once.
    out = jax.block_until_ready(se_block(x, w1, w2))
    assert out.shape == (B, C, D, H, W)
    assert jnp.allclose(out, ref, atol=1e-5, rtol=1e-5)

    # Exercise the multi-tile two-phase pipeline (nt > 1).
    out_tiled = jax.block_until_ready(se_block(x, w1, w2, tile_s=128))
    assert jnp.allclose(out_tiled, ref, atol=1e-5, rtol=1e-5)

    # Exercise the non-128-multiple spatial path (padding instead of a
    # full-extent fallback block).
    x2 = jax.random.normal(kx2, (B, C, 3, 4, 5), dtype=jnp.float32)
    out_pad = jax.block_until_ready(se_block(x2, w1, w2))
    assert jnp.allclose(out_pad, se_block_ref(x2, w1, w2), atol=1e-5, rtol=1e-5)

    print("KERNEL_OK")
</pallas_src>

<mosaic_0001>
module attributes {stable_mosaic.version = 11 : i64} {
  func.func @_se_fused_kernel(%arg0: i32, %arg1: i32, %arg2: i32, %arg3: memref<2x32x512xf32, #tpu.memory_space<vmem>>, %arg4: memref<32x2xf32, #tpu.memory_space<vmem>>, %arg5: memref<2x32xf32, #tpu.memory_space<vmem>>, %arg6: memref<2x32x512xf32, #tpu.memory_space<vmem>>, %arg7: memref<2x32x128xf32, #tpu.memory_space<vmem>>, %arg8: memref<2x32x1xf32, #tpu.memory_space<vmem>>) attributes {dimension_semantics = [#tpu.dimension_semantics<parallel>, #tpu.dimension_semantics<arbitrary>, #tpu.dimension_semantics<arbitrary>], iteration_bounds = array<i64: 1, 2, 1>, scalar_prefetch = 0 : i64, scratch_operands = 2 : i64, tpu.core_type = #tpu.core_type<tc>, window_params = [{transform_indices = @transform_0, window_bounds = array<i64: 2, 32, 512>}, {pipeline_mode = #tpu.pipeline_mode<synchronous>, transform_indices = @transform_1, window_bounds = array<i64: 32, 2>}, {pipeline_mode = #tpu.pipeline_mode<synchronous>, transform_indices = @transform_2, window_bounds = array<i64: 2, 32>}, {transform_indices = @transform_3, window_bounds = array<i64: 2, 32, 512>}]} {
    %c0_i32 = arith.constant 0 : i32
    %0 = arith.cmpi eq, %arg1, %c0_i32 : i32
    %c0_i32_0 = arith.constant 0 : i32
    %1 = arith.cmpi eq, %arg2, %c0_i32_0 : i32
    %2 = arith.andi %0, %1 : i1
    %3 = arith.extui %2 : i1 to i32
    %c0_i32_1 = arith.constant 0 : i32
    %4 = arith.cmpi ne, %3, %c0_i32_1 : i32
    scf.if %4 {
      %cst = arith.constant 0.000000e+00 : f32
      %16 = vector.broadcast %cst : f32 to vector<2x32x128xf32>
      %c0 = arith.constant 0 : index
      %c0_8 = arith.constant 0 : index
      %c0_9 = arith.constant 0 : index
      %17 = vector.load %arg7[%c0, %c0_8, %c0_9] : memref<2x32x128xf32, #tpu.memory_space<vmem>>, vector<2x32x128xf32>
      tpu.vector_store %arg7[%c0, %c0_8, %c0_9], %16 {strides = array<i32>} : memref<2x32x128xf32, #tpu.memory_space<vmem>>, vector<2x32x128xf32>,
    } else {
    }
    %c0_i32_2 = arith.constant 0 : i32
    %5 = arith.cmpi eq, %arg1, %c0_i32_2 : i32
    %6 = arith.extui %5 : i1 to i32
    %c0_i32_3 = arith.constant 0 : i32
    %7 = arith.cmpi ne, %6, %c0_i32_3 : i32
    scf.if %7 {
      %cst = arith.constant 0.000000e+00 : f32
      %16 = vector.broadcast %cst : f32 to vector<2x32x128xf32>
      %c0_i32_8 = arith.constant 0 : i32
      %c128_i32 = arith.constant 128 : i32
      %17 = arith.muli %c0_i32_8, %c128_i32 : i32
      %18 = tpu.assume_multiple %17, 128 : i32
      %c0 = arith.constant 0 : index
      %c0_9 = arith.constant 0 : index
      %19 = arith.index_cast %18 : i32 to index
      %20 = vector.load %arg3[%c0, %c0_9, %19] : memref<2x32x512xf32, #tpu.memory_space<vmem>>, vector<2x32x128xf32>
      %21 = arith.addf %16, %20 : vector<2x32x128xf32>
      %c1_i32_10 = arith.constant 1 : i32
      %c128_i32_11 = arith.constant 128 : i32
      %22 = arith.muli %c1_i32_10, %c128_i32_11 : i32
      %23 = tpu.assume_multiple %22, 128 : i32
      %c0_12 = arith.constant 0 : index
      %c0_13 = arith.constant 0 : index
      %24 = arith.index_cast %23 : i32 to index
      %25 = vector.load %arg3[%c0_12, %c0_13, %24] : memref<2x32x512xf32, #tpu.memory_space<vmem>>, vector<2x32x128xf32>
      %26 = arith.addf %21, %25 : vector<2x32x128xf32>
      %c2_i32 = arith.constant 2 : i32
      %c128_i32_14 = arith.constant 128 : i32
      %27 = arith.muli %c2_i32, %c128_i32_14 : i32
      %28 = tpu.assume_multiple %27, 128 : i32
      %c0_15 = arith.constant 0 : index
      %c0_16 = arith.constant 0 : index
      %29 = arith.index_cast %28 : i32 to index
      %30 = vector.load %arg3[%c0_15, %c0_16, %29] : memref<2x32x512xf32, #tpu.memory_space<vmem>>, vector<2x32x128xf32>
      %31 = arith.addf %26, %30 : vector<2x32x128xf32>
      %c3_i32 = arith.constant 3 : i32
      %c128_i32_17 = arith.constant 128 : i32
      %32 = arith.muli %c3_i32, %c128_i32_17 : i32
      %33 = tpu.assume_multiple %32, 128 : i32
      %c0_18 = arith.constant 0 : index
      %c0_19 = arith.constant 0 : index
      %34 = arith.index_cast %33 : i32 to index
      %35 = vector.load %arg3[%c0_18, %c0_19, %34] : memref<2x32x512xf32, #tpu.memory_space<vmem>>, vector<2x32x128xf32>
      %36 = arith.addf %31, %35 : vector<2x32x128xf32>
      %c4_i32 = arith.constant 4 : i32
      %c0_20 = arith.constant 0 : index
      %c0_21 = arith.constant 0 : index
      %c0_22 = arith.constant 0 : index
      %37 = vector.load %arg7[%c0_20, %c0_21, %c0_22] : memref<2x32x128xf32, #tpu.memory_space<vmem>>, vector<2x32x128xf32>
      %38 = arith.addf %37, %36 : vector<2x32x128xf32>
      %c0_23 = arith.constant 0 : index
      %c0_24 = arith.constant 0 : index
      %c0_25 = arith.constant 0 : index
      %39 = vector.load %arg7[%c0_23, %c0_24, %c0_25] : memref<2x32x128xf32, #tpu.memory_space<vmem>>, vector<2x32x128xf32>
      tpu.vector_store %arg7[%c0_23, %c0_24, %c0_25], %38 {strides = array<i32>} : memref<2x32x128xf32, #tpu.memory_space<vmem>>, vector<2x32x128xf32>,
    } else {
    }
    %c1_i32 = arith.constant 1 : i32
    %8 = arith.cmpi eq, %arg1, %c1_i32 : i32
    %c0_i32_4 = arith.constant 0 : i32
    %9 = arith.cmpi eq, %arg2, %c0_i32_4 : i32
    %10 = arith.andi %8, %9 : i1
    %11 = arith.extui %10 : i1 to i32
    %c0_i32_5 = arith.constant 0 : i32
    %12 = arith.cmpi ne, %11, %c0_i32_5 : i32
    scf.if %12 {
      %c0 = arith.constant 0 : index
      %c0_8 = arith.constant 0 : index
      %c0_9 = arith.constant 0 : index
      %16 = vector.load %arg7[%c0, %c0_8, %c0_9] : memref<2x32x128xf32, #tpu.memory_space<vmem>>, vector<2x32x128xf32>
      %cst = arith.constant dense<0.000000e+00> : vector<2x32xf32>
      %17 = vector.multi_reduction <add>, %16, %cst [2] : vector<2x32x128xf32> to vector<2x32xf32>
      %cst_10 = arith.constant 1.000000e+00 : f32
      %cst_11 = arith.constant 5.120000e+02 : f32
      %18 = arith.divf %cst_10, %cst_11 : f32
      %19 = vector.broadcast %18 : f32 to vector<2x32xf32>
      %20 = arith.mulf %17, %19 : vector<2x32xf32>
      %c0_12 = arith.constant 0 : index
      %c0_13 = arith.constant 0 : index
      %21 = vector.load %arg4[%c0_12, %c0_13] : memref<32x2xf32, #tpu.memory_space<vmem>>, vector<32x2xf32>
      %cst_14 = arith.constant dense<0.000000e+00> : vector<2x2xf32>
      %22 = tpu.matmul %20, %21, %cst_14 {dimension_numbers = #tpu.dot_dimension_numbers<[1], [0], [0], [1], [0, 0, 1, 1], [], []>} : vector<2x32xf32>, vector<32x2xf32>, vector<2x2xf32> -> vector<2x2xf32>
      %cst_15 = arith.constant 0.000000e+00 : f32
      %23 = vector.broadcast %cst_15 : f32 to vector<2x2xf32>
      %24 = arith.maximumf %22, %23 : vector<2x2xf32>
      %c0_16 = arith.constant 0 : index
      %c0_17 = arith.constant 0 : index
      %25 = vector.load %arg5[%c0_16, %c0_17] : memref<2x32xf32, #tpu.memory_space<vmem>>, vector<2x32xf32>
      %cst_18 = arith.constant dense<0.000000e+00> : vector<2x32xf32>
      %26 = tpu.matmul %24, %25, %cst_18 {dimension_numbers = #tpu.dot_dimension_numbers<[1], [0], [0], [1], [0, 0, 1, 1], [], []>} : vector<2x2xf32>, vector<2x32xf32>, vector<2x32xf32> -> vector<2x32xf32>
      %27 = arith.negf %26 : vector<2x32xf32>
      %28 = math.exp %27 : vector<2x32xf32>
      %cst_19 = arith.constant 1.000000e+00 : f32
      %29 = vector.broadcast %cst_19 : f32 to vector<2x32xf32>
      %30 = arith.addf %29, %28 : vector<2x32xf32>
      %31 = arith.divf %29, %30 : vector<2x32xf32>
      %32 = vector.shape_cast %31 : vector<2x32xf32> to vector<2x32x1xf32>
      %c0_20 = arith.constant 0 : index
      %c0_21 = arith.constant 0 : index
      %c0_22 = arith.constant 0 : index
      %33 = vector.load %arg8[%c0_20, %c0_21, %c0_22] : memref<2x32x1xf32, #tpu.memory_space<vmem>>, vector<2x32x1xf32>
      tpu.vector_store %arg8[%c0_20, %c0_21, %c0_22], %32 {strides = array<i32>} : memref<2x32x1xf32, #tpu.memory_space<vmem>>, vector<2x32x1xf32>,
    } else {
    }
    %c1_i32_6 = arith.constant 1 : i32
    %13 = arith.cmpi eq, %arg1, %c1_i32_6 : i32
    %14 = arith.extui %13 : i1 to i32
    %c0_i32_7 = arith.constant 0 : i32
    %15 = arith.cmpi ne, %14, %c0_i32_7 : i32
    scf.if %15 {
      %c0 = arith.constant 0 : index
      %c0_8 = arith.constant 0 : index
      %c0_9 = arith.constant 0 : index
      %16 = vector.load %arg3[%c0, %c0_8, %c0_9] : memref<2x32x512xf32, #tpu.memory_space<vmem>>, vector<2x32x512xf32>
      %c0_10 = arith.constant 0 : index
      %c0_11 = arith.constant 0 : index
      %c0_12 = arith.constant 0 : index
      %17 = vector.load %arg8[%c0_10, %c0_11, %c0_12] : memref<2x32x1xf32, #tpu.memory_space<vmem>>, vector<2x32x1xf32>
      %18 = vector.broadcast %17 : vector<2x32x1xf32> to vector<2x32x512xf32>
      %19 = arith.mulf %16, %18 : vector<2x32x512xf32>
      %c0_13 = arith.constant 0 : index
      %c0_14 = arith.constant 0 : index
      %c0_15 = arith.constant 0 : index
      %20 = vector.load %arg6[%c0_13, %c0_14, %c0_15] : memref<2x32x512xf32, #tpu.memory_space<vmem>>, vector<2x32x512xf32>
      tpu.vector_store %arg6[%c0_13, %c0_14, %c0_15], %19 {strides = array<i32>} : memref<2x32x512xf32, #tpu.memory_space<vmem>>, vector<2x32x512xf32>,
    } else {
    }
    return
  }
  func.func @transform_0(%arg0: i32, %arg1: i32, %arg2: i32) -> (i32, i32, i32) {
    %c0_i32 = arith.constant 0 : i32
    %c0_i32_0 = arith.constant 0 : i32
    return %arg0, %c0_i32, %arg2 : i32, i32, i32
  }
  func.func @transform_1(%arg0: i32, %arg1: i32, %arg2: i32) -> (i32, i32) {
    %c0_i32 = arith.constant 0 : i32
    %c0_i32_0 = arith.constant 0 : i32
    %c0_i32_1 = arith.constant 0 : i32
    return %c0_i32, %c0_i32_0 : i32, i32
  }
  func.func @transform_2(%arg0: i32, %arg1: i32, %arg2: i32) -> (i32, i32) {
    %c0_i32 = arith.constant 0 : i32
    %c0_i32_0 = arith.constant 0 : i32
    %c0_i32_1 = arith.constant 0 : i32
    return %c0_i32, %c0_i32_0 : i32, i32
  }
  func.func @transform_3(%arg0: i32, %arg1: i32, %arg2: i32) -> (i32, i32, i32) {
    %0 = arith.muli %arg2, %arg1 : i32
    %c0_i32 = arith.constant 0 : i32
    %c0_i32_0 = arith.constant 0 : i32
    return %arg0, %c0_i32, %0 : i32, i32, i32
  }
}

</mosaic_0001>

<bundles_post_ra>
// kernel: tpu_custom_call.1
= control target key start
LH: loop header
LB: loop body
LE: loop exit
PB: predicated region body
PF: predicated region fallthrough
CT: control target
= control target key end

     0   :  { %8 = vsyncpa [#allocation5], 0  ;;  %s1400_s0 = inlined_call_operand.hbm [shape: f32[2,32,512], index: 0, kind: input, shape index: {}]   ;;  %s1401_s1 = inlined_call_operand.hbm [shape: f32[32,2], index: 1, kind: input, shape index: {}]   ;;  %s1402_s2 = inlined_call_operand.hbm [shape: f32[2,32], index: 2, kind: input, shape index: {}]   ;;  %s1403_s3 = inlined_call_operand.hbm [shape: f32[2,32,512], index: 3, kind: output, shape index: {}]  }
   0x1   :  { %9 = vsyncpa [#allocation8], 0 }
   0x2   :  { %10 = vsyncpa [#allocation6], 0 }
   0x3   :  { %12 = vsyncpa [#allocation6 + $0x1], 0  ;;  %s1226_s12 = smov 0   ;;  %s1228_s13 = smov 0  }
   0x4   :  { %s1230_s14 = smov 0  }
   0x5 LB: > { %s1191_s15 = smov [#allocation7]   ;;  %s908_s17 = sadd.s32 4294967295, %s1189_s14   ;;  %s1189_s14 = sphi %s1230_s14, %s18_s14   ;;  %s1185_s13 = sphi %s1228_s13, %s1417_s13   ;;  %s1181_s12 = sphi %s1226_s12, %s1416_s12  }
   0x6   : > { %s173_s16 = sshll.u32 %s1191_s15, 4  ;;  %s909_s18 = sadd.s32 4294967294, %s1189_s14   ;;  %s174_s16 = int_to_ptr.vmem [resolvable:$true] %s173_s16 }
   0x7   : > { %p910_p0 = scmp.ge.s32.totalorder %s1189_s14, 1  ;;  %p142_p1 = scmp.lt.s32.totalorder %s1189_s14, 3 }
   0x8   : > { %p1247_p2 = scmp.eq.s32.totalorder %s908_s17, 0  ;;  %s33_s22 = sadd.s32 1, %s1185_s13 }
   0x9   : > { %p1251_p3 = pnand %p910_p0, %p142_p1  ;;  %p1264_p6 = scmp.ge.s32.totalorder %s33_s22, 2 }
   0xa   : > { %s1407_s19 = scalar_select %p1247_p2, 1, 0 }
   0xb   : > { %s1408_s20 = scalar_select %p1251_p3, 1, 0 }
   0xc   : > { %p977_p4 = pneg %p1251_p3  ;;  %s1045_s26 = scalar_lea.hbm %s1401_s1, 512 }
   0xd   : > { %s1410_s23 = scalar_select %p1264_p6, 1, 0 }
   0xe   : > { %p1259_p5 = pnand %p1247_p2, %p977_p4  ;;  %p1046_p7 = scmp.ne.s32.totalorder %s1401_s1, %s1045_s26 }
   0xf   : > { %p1052_p11 = scmp.lt.u32.totalorder %s1045_s26, %s1401_s1 }
  0x10   : > { %p1276_p8 = pneg %p1259_p5 }
  0x12   : > { %p1048_p9 = pnand %p1276_p8, %p1046_p7 }
  0x14   : > { %p1049_p10 = pneg %p1048_p9 }
  0x16   : > { %p1054_p12 = pnand %p1052_p11, %p1049_p10 }
  0x18   : > { %1057 = shalt.err (!%p1054_p12)
}
  0x19   : > { %s1058_s5 = scalar_lea.vmem %s174_s16, 512  ;;  %p1066_p4 = scmp.lt.s32.totalorder %s174_s16, %s174_s16 }
  0x1a   : > { %p1059_p13 = scmp.ne.s32.totalorder %s174_s16, %s1058_s5  ;;  %p1067_p2 = scmp.lt.s32.totalorder %s1058_s5, %s1058_s5 }
  0x1c   : > { %p1061_p0 = pnand %p1059_p13, %p1276_p8  ;;  %p1068_p3 = por %p1067_p2, %p1066_p4 }
  0x1e   : > { %p1062_p1 = pneg %p1061_p0 }
  0x20   : > { %p1069_p6 = pnand %p1068_p3, %p1062_p1 }
  0x22   : > { %1072 = shalt.err (!%p1069_p6)
}
  0x23   : > { %s1192_s6 = smov 128   ;;  %s1193_s7 = smov 8  }
  0x24   : > { %983 = dma.hbm_to_vmem [thread:$0]  (!%p1259_p5), %s1401_s1, 512, %s174_s16, [#allocation8], %s1192_s6, %s1192_s6, %s1193_s7  }
  0x25   : > { %p1412_p7 = scmp.ne.s32.totalorder %s1410_s23, 0  ;;  %s1194_s10 = smov [#allocation4]  }
  0x26   : > { %s160_s11 = sshll.u32 %s1194_s10, 4  ;;  %s1073_s25 = scalar_lea.hbm %s1400_s0, 4096  ;;  %s161_s11 = int_to_ptr.vmem [resolvable:$true] %s160_s11 }
  0x27   : > { %s1419_s22 = smov (%p1412_p7, %s33_s22), 0  ;;  %p1074_p2 = scmp.ne.s32.totalorder %s1400_s0, %s1073_s25 }
  0x28   : > { %p1080_p9 = scmp.lt.u32.totalorder %s1073_s25, %s1400_s0 }
  0x29   : > { %p1076_p3 = pnand %p1074_p2, %p1276_p8 }
  0x2b   : > { %p1077_p6 = pneg %p1076_p3 }
  0x2d   : > { %p1082_p10 = pnand %p1080_p9, %p1077_p6 }
  0x2f   : > { %1085 = shalt.err (!%p1082_p10)
}
  0x30   : > { %s1086_s16 = scalar_lea.vmem %s161_s11, 4096  ;;  %p1094_p0 = scmp.lt.s32.totalorder %s161_s11, %s161_s11 }
  0x31   : > { %p1087_p11 = scmp.ne.s32.totalorder %s161_s11, %s1086_s16  ;;  %p1095_p1 = scmp.lt.s32.totalorder %s1086_s16, %s1086_s16 }
  0x33   : > { %p1089_p12 = pnand %p1087_p11, %p1276_p8  ;;  %p1096_p4 = por %p1095_p1, %p1094_p0 }
  0x35   : > { %p1090_p13 = pneg %p1089_p12 }
  0x37   : > { %p1097_p7 = pnand %p1096_p4, %p1090_p13 }
  0x39   : > { %1100 = shalt.err (!%p1097_p7)
}
  0x3a   : > { %s1195_s23 = smov 512   ;;  %s1196_s4 = smov 32  }
  0x3b   : > { %980 = dma.hbm_to_vmem [thread:$0]  (!%p1259_p5), %s1400_s0, 4096, %s161_s11, [#allocation5], %s1195_s23, %s1195_s23, %s1196_s4  }
  0x3c   : > { %s1197_s7 = smov [#allocation9]   ;;  %s1101_s15 = scalar_lea.hbm %s1402_s2, 32 }
  0x3d   : > { %s187_s8 = sshll.u32 %s1197_s7, 4  ;;  %p1102_p2 = scmp.ne.s32.totalorder %s1402_s2, %s1101_s15  ;;  %s188_s8 = int_to_ptr.vmem [resolvable:$true] %s187_s8 }
  0x3e   : > { %p1108_p9 = scmp.lt.u32.totalorder %s1101_s15, %s1402_s2 }
  0x3f   : > { %p1104_p3 = pnand %p1102_p2, %p1276_p8 }
  0x41   : > { %p1105_p6 = pneg %p1104_p3 }
  0x43   : > { %p1110_p10 = pnand %p1108_p9, %p1105_p6 }
  0x45   : > { %1113 = shalt.err (!%p1110_p10)
}
  0x46   : > { %s1114_s11 = scalar_lea.vmem %s188_s8, 32  ;;  %p1122_p0 = scmp.lt.s32.totalorder %s188_s8, %s188_s8 }
  0x47   : > { %p1115_p11 = scmp.ne.s32.totalorder %s188_s8, %s1114_s11  ;;  %p1123_p1 = scmp.lt.s32.totalorder %s1114_s11, %s1114_s11 }
  0x49   : > { %p1117_p12 = pnand %p1115_p11, %p1276_p8  ;;  %p1124_p4 = por %p1123_p1, %p1122_p0 }
  0x4b   : > { %p1118_p13 = pneg %p1117_p12 }
  0x4d   : > { %p1125_p7 = pnand %p1124_p4, %p1118_p13 }
  0x4f   : > { %1128 = shalt.err (!%p1125_p7)
}
  0x50   : > { %986 = dma.hbm_to_vmem [thread:$0]  (!%p1259_p5), %s1402_s2, 32, %s188_s8, [#allocation8]  }
  0x51   : > { %p1413_p2 = scmp.ne.s32.totalorder %s1408_s20, 0 }
  0x52   : > { %p1414_p3 = scmp.ne.s32.totalorder (!%p1413_p2), %s1407_s19, 0 }
  0x53   : > { %200 = sbr.rel (%p1413_p2) target bundleno = 1046 (0x416), region = 32 }
  0x5a   : > { %1168 = dma.done.wait (%p1414_p3), [#allocation5], 4096  }
  0x5b   : > { %1170 = vsyncadd (%p1414_p3), [#allocation5], 4294963200 }
  0x5c   : > { %1172 = dma.done.wait (%p1414_p3), [#allocation8], 544  }
  0x5d   : > { %1174 = vsyncadd (%p1414_p3), [#allocation8], 4294966752  ;;  %p232_p8 = scmp.eq.s32.totalorder %s1181_s12, 0 }
  0x5e   : > { %v1198_v0 = vmov (%p232_p8), 0.0  }
  0x5f   : > { %237 = sbr.rel (!%p232_p8) target bundleno = 102 (0x66), region = 48  ;;  %238 = vst [vmem:[#allocation2] sm:$0xff] (%p232_p8), %v1198_v0  ;;  %239 = vst [vmem:[#allocation2 + $0x8] sm:$0xff] (%p232_p8), %v1198_v0 }
  0x60   : > { %240 = vst [vmem:[#allocation2 + $0x10] sm:$0xff] (%p232_p8), %v1198_v0  ;;  %241 = vst [vmem:[#allocation2 + $0x18] sm:$0xff] (%p232_p8), %v1198_v0 }
  0x61   : > { %242 = vst [vmem:[#allocation2 + $0x20] sm:$0xff] (%p232_p8), %v1198_v0  ;;  %243 = vst [vmem:[#allocation2 + $0x28] sm:$0xff] (%p232_p8), %v1198_v0 }
  0x62   : > { %244 = vst [vmem:[#allocation2 + $0x30] sm:$0xff] (%p232_p8), %v1198_v0  ;;  %245 = vst [vmem:[#allocation2 + $0x38] sm:$0xff] (%p232_p8), %v1198_v0 }
  0x66 PF: > { %p919_p5 = scmp.ne.s32.totalorder %s1181_s12, 0 }
  0x67   : > { %v249_v1 = vld [vmem:[#allocation4] sm:$0xff] (!%p919_p5)  ;;  %v266_v2 = vld [vmem:[#allocation4 + $0x8] sm:$0xff] (!%p919_p5)  ;;  %v283_v3 = vld [vmem:[#allocation4 + $0x10] sm:$0xff] (!%p919_p5) }
  0x68   : > { %248 = sbr.rel (%p919_p5) target bundleno = 124 (0x7c), region = 52  ;;  %v274_v4 = vadd.f32 (!%p919_p5), %v266_v2, %v249_v1  ;;  %v250_v5 = vld [vmem:[#allocation4 + $0x20] sm:$0xff] (!%p919_p5)  ;;  %v300_v6 = vld [vmem:[#allocation4 + $0x18] sm:$0xff] (!%p919_p5)  ;;  %v267_v7 = vld [vmem:[#allocation4 + $0x28] sm:$0xff] (!%p919_p5) }
  0x69   : > { %v284_v8 = vld [vmem:[#allocation4 + $0x30] sm:$0xff] (!%p919_p5)  ;;  %v316_v10 = vld [vmem:[#allocation2] sm:$0xff] (!%p919_p5)  ;;  %v275_v11 = vadd.f32 (!%p919_p5), %v267_v7, %v250_v5  ;;  %v268_v13 = vld [vmem:[#allocation4 + $0x48] sm:$0xff] (!%p919_p5) }
  0x6a   : > { %v291_v9 = vadd.f32 (!%p919_p5), %v283_v3, %v274_v4  ;;  %v251_v12 = vld [vmem:[#allocation4 + $0x40] sm:$0xff] (!%p919_p5)  ;;  %v301_v14 = vld [vmem:[#allocation4 + $0x38] sm:$0xff] (!%p919_p5)  ;;  %v285_v16 = vld [vmem:[#allocation4 + $0x50] sm:$0xff] (!%p919_p5) }
  0x6b   : > { %v276_v15 = vadd.f32 (!%p919_p5), %v268_v13, %v251_v12  ;;  %v302_v17 = vld [vmem:[#allocation4 + $0x58] sm:$0xff] (!%p919_p5)  ;;  %v292_v19 = vadd.f32 (!%p919_p5), %v284_v8, %v275_v11  ;;  %v252_v20 = vld [vmem:[#allocation4 + $0x60] sm:$0xff] (!%p919_p5)  ;;  %v269_v21 = vld [vmem:[#allocation4 + $0x68] sm:$0xff] (!%p919_p5) }
  0x6c   : > { %v308_v18 = vadd.f32 (!%p919_p5), %v300_v6, %v291_v9  ;;  %v286_v22 = vld [vmem:[#allocation4 + $0x70] sm:$0xff] (!%p919_p5)  ;;  %v317_v23 = vld [vmem:[#allocation2 + $0x8] sm:$0xff] (!%p919_p5)  ;;  %v277_v26 = vadd.f32 (!%p919_p5), %v269_v21, %v252_v20  ;;  %v253_v27 = vld [vmem:[#allocation4 + $0x80] sm:$0xff] (!%p919_p5) }
  0x6d   : > { %v293_v24 = vadd.f32 (!%p919_p5), %v285_v16, %v276_v15  ;;  %v318_v25 = vld [vmem:[#allocation2 + $0x10] sm:$0xff] (!%p919_p5)  ;;  %v309_v29 = vadd.f32 (!%p919_p5), %v301_v14, %v292_v19  ;;  %v303_v30 = vld [vmem:[#allocation4 + $0x78] sm:$0xff] (!%p919_p5)  ;;  %v270_v31 = vld [vmem:[#allocation4 + $0x88] sm:$0xff] (!%p919_p5) }
  0x6e   : > { %v324_v28 = vadd.f32 (!%p919_p5), %v316_v10, %v308_v18  ;;  %v287_v32 = vld [vmem:[#allocation4 + $0x90] sm:$0xff] (!%p919_p5)  ;;  %v294_v34 = vadd.f32 (!%p919_p5), %v286_v22, %v277_v26  ;;  %v319_v35 = vld [vmem:[#allocation2 + $0x18] sm:$0xff] (!%p919_p5)  ;;  %v278_v36 = vadd.f32 (!%p919_p5), %v270_v31, %v253_v27  ;;  %v254_v37 = vld [vmem:[#allocation4 + $0xa0] sm:$0xff] (!%p919_p5) }
  0x6f   : > { %v310_v33 = vadd.f32 %v302_v17, %v293_v24  ;;  %v271_v38 = vld [vmem:[#allocation4 + $0xa8] sm:$0xff]  ;;  %v325_v39 = vadd.f32 %v317_v23, %v309_v29  ;;  %v304_v40 = vld [vmem:[#allocation4 + $0x98] sm:$0xff]  ;;  %v288_v42 = vld [vmem:[#allocation4 + $0xb0] sm:$0xff] }
  0x70   : > { %332 = vst [vmem:[#allocation2] sm:$0xff] %v324_v28  ;;  %v279_v41 = vadd.f32 %v271_v38, %v254_v37  ;;  %v305_v43 = vld [vmem:[#allocation4 + $0xb8] sm:$0xff]  ;;  %v311_v45 = vadd.f32 %v303_v30, %v294_v34  ;;  %v295_v46 = vadd.f32 %v287_v32, %v278_v36  ;;  %v255_v47 = vld [vmem:[#allocation4 + $0xc0] sm:$0xff]  ;;  %v272_v48 = vld [vmem:[#allocation4 + $0xc8] sm:$0xff] }
  0x71   : > { %v326_v44 = vadd.f32 %v318_v25, %v310_v33  ;;  %v289_v49 = vld [vmem:[#allocation4 + $0xd0] sm:$0xff]  ;;  %333 = vst [vmem:[#allocation2 + $0x8] sm:$0xff] %v325_v39  ;;  %v320_v50 = vld [vmem:[#allocation2 + $0x20] sm:$0xff]  ;;  %v321_v52 = vld [vmem:[#allocation2 + $0x28] sm:$0xff]  ;;  %v280_v53 = vadd.f32 %v272_v48, %v255_v47 }
  0x72   : > { %v296_v51 = vadd.f32 %v288_v42, %v279_v41  ;;  %v256_v54 = vld [vmem:[#allocation4 + $0xe0] sm:$0xff]  ;;  %v327_v55 = vadd.f32 %v319_v35, %v311_v45  ;;  %v312_v56 = vadd.f32 %v304_v40, %v295_v46  ;;  %v306_v57 = vld [vmem:[#allocation4 + $0xd8] sm:$0xff]  ;;  %v273_v58 = vld [vmem:[#allocation4 + $0xe8] sm:$0xff] }
  0x73   : > { %334 = vst [vmem:[#allocation2 + $0x10] sm:$0xff] %v326_v44  ;;  %v290_v59 = vld [vmem:[#allocation4 + $0xf0] sm:$0xff]  ;;  %v297_v61 = vadd.f32 %v289_v49, %v280_v53  ;;  %v281_v62 = vadd.f32 %v273_v58, %v256_v54  ;;  %v307_v1 = vld [vmem:[#allocation4 + $0xf8] sm:$0xff] }
  0x74   : > { %v313_v60 = vadd.f32 %v305_v43, %v296_v51  ;;  %335 = vst [vmem:[#allocation2 + $0x18] sm:$0xff] %v327_v55  ;;  %v328_v63 = vadd.f32 %v320_v50, %v312_v56  ;;  %v322_v0 = vld [vmem:[#allocation2 + $0x30] sm:$0xff]  ;;  %v323_v5 = vld [vmem:[#allocation2 + $0x38] sm:$0xff] }
  0x75   : > { %v314_v3 = vadd.f32 %v306_v57, %v297_v61  ;;  %v298_v4 = vadd.f32 %v290_v59, %v281_v62 }
  0x76   : > { %v329_v2 = vadd.f32 %v321_v52, %v313_v60  ;;  %336 = vst [vmem:[#allocation2 + $0x20] sm:$0xff] %v328_v63 }
  0x77   : > { %v330_v6 = vadd.f32 %v322_v0, %v314_v3  ;;  %v315_v7 = vadd.f32 %v307_v1, %v298_v4 }
  0x78   : > { %337 = vst [vmem:[#allocation2 + $0x28] sm:$0xff] %v329_v2 }
  0x79   : > { %338 = vst [vmem:[#allocation2 + $0x30] sm:$0xff] %v330_v6  ;;  %v331_v8 = vadd.f32 %v323_v5, %v315_v7 }
  0x7b   : > { %339 = vst [vmem:[#allocation2 + $0x38] sm:$0xff] %v331_v8 }
  0x7c PF: > { %p340_p6 = scmp.eq.s32.totalorder %s1181_s12, 1 }
  0x7d   : > { %v349_v9 = vld [vmem:[#allocation2 + $0x20] sm:$0xff] (%p340_p6)  ;;  %v346_v12 = vld [vmem:[#allocation2 + $0x8] sm:$0xff] (%p340_p6)  ;;  %v347_v14 = vld [vmem:[#allocation2 + $0x10] sm:$0xff] (%p340_p6)  ;;  %v1199_v20 = vmov (%p340_p6), 0.0|0.0   ;;  %vm1200_vm0 = vmmov (%p340_p6), 0   ;;  %v1201_v24 = vmov (%p340_p6), 0.0   ;;  %v389_v25 = vlaneseq (%p340_p6) }
  0x7e   : > { %344 = sbr.rel (!%p340_p6) target bundleno = 873 (0x369), region = 56  ;;  %v345_v10 = vld [vmem:[#allocation2] sm:$0xff] (%p340_p6)  ;;  %361 = vadd.xlane.f32.xlu1 (%p340_p6), %v349_v9  ;;  %v348_v16 = vld [vmem:[#allocation2 + $0x18] sm:$0xff] (%p340_p6)  ;;  %v378_v18 = vld [vmem:[#allocation7 + $0x8] sm:$0xff] (%p340_p6)  ;;  %955 = vmatprep.subr.bf16.mxu0 (%p340_p6), %v1199_v20  ;;  %vm400_vm1 = vcmask (%p340_p6), 130112   ;;  %vm407_vm2 = vcmask (%p340_p6), 195712  }
  0x7f   : > { %353 = vadd.xlane.f32.xlu0 (%p340_p6), %v345_v10  ;;  %v350_v11 = vld [vmem:[#allocation2 + $0x28] sm:$0xff] (%p340_p6)  ;;  %v377_v17 = vld [vmem:[#allocation7] sm:$0xff] (%p340_p6)  ;;  %v379_v21 = vld [vmem:[#allocation7 + $0x10] sm:$0xff] (%p340_p6)  ;;  %947 = vmatprep.mubr.msk.f32.mxu0 (%p340_p6), %vm1200_vm0, %v1201_v24  ;;  %v390_v28 = vand.u32 (%p340_p6), 127, %v389_v25  ;;  %v1345_v30 = vshrl.u32 (%p340_p6), %v389_v25, 7  ;;  %vm414_vm3 = vcmask (%p340_p6), 261312  }
  0x80   : > { %v351_v13 = vld [vmem:[#allocation2 + $0x30] sm:$0xff] (%p340_p6)  ;;  %v956_v19 = vpack.c.bf16 (%p340_p6), %v378_v18, %v377_v17  ;;  %v380_v22 = vld [vmem:[#allocation7 + $0x18] sm:$0xff] (%p340_p6)  ;;  %950 = vmatprep.subr.mxu1 (%p340_p6), %v1201_v24  ;;  %952 = vmatprep.mubr.msk.f32.mxu1 (%p340_p6), %vm1200_vm0, %v1201_v24  ;;  %vm435_vm4 = vcmask (%p340_p6), 1041409   ;;  %vm437_vm5 = vcmask (%p340_p6), 261120   ;;  %v511_v2 = vld [vmem:[#allocation9] sm:$0x3] (%p340_p6) }
  0x81   : > { %v959_v23 = vpack.c.bf16 (%p340_p6), %v380_v22, %v379_v21  ;;  %v395_v29 = vadd.s32 (%p340_p6), 4294967288, %v390_v28  ;;  %v402_v33 = vadd.s32 (%p340_p6), 4294967280, %v390_v28  ;;  %v409_v37 = vadd.s32 (%p340_p6), 4294967272, %v390_v28 }
  0x82   : > { %363 = vadd.xlane.f32.xlu1 (%p340_p6), %v350_v11  ;;  %v352_v15 = vld [vmem:[#allocation2 + $0x38] sm:$0xff] (%p340_p6)  ;;  %957 = vmatpush3.bf16.msra.mxu0 (%p340_p6), %v956_v19  ;;  %v393_v38 = vsub.s32 (%p340_p6), %v390_v28, %v1345_v30  ;;  %vm516_vm6 = vcmask (%p340_p6), 1041408   ;;  %vm512_vm7 = vcmask (%p340_p6), 15360   ;;  %v598_v11 = vsub.s32 (%p340_p6), 0, %v1345_v30 }
  0x83   : > { %355 = vadd.xlane.f32.xlu0 (%p340_p6), %v346_v12  ;;  %958 = vmatprep.subr.bf16.mxu0 (%p340_p6), %v1199_v20  ;;  %v398_v34 = vsub.s32 (%p340_p6), %v395_v29, %v1345_v30  ;;  %v405_v39 = vsub.s32 (%p340_p6), %v402_v33, %v1345_v30  ;;  %v412_v48 = vsub.s32 (%p340_p6), %v409_v37, %v1345_v30  ;;  %vm634_vm8 = vcmask (%p340_p6), 7168  }
  0x84   : > { %951 = vmatpush3.msk.msra.mxu1 (%p340_p6), %vm516_vm6, %v511_v2 }
  0x86   : > { %365 = vadd.xlane.f32.xlu1 %v351_v13  ;;  %960 = vmatpush3.bf16.msra.mxu0 %v959_v23 }
  0x87   : > { %357 = vadd.xlane.f32.xlu0 %v347_v14  ;;  %v617_v14 = vsub.s32 1, %v1345_v30 }
  0x8a   : > { %367 = vadd.xlane.f32.xlu1 %v352_v15 }
  0x8b   : > { %359 = vadd.xlane.f32.xlu0 %v348_v16 }
 0x10b   : > { %v362_v26 = vpop.xlane.xlu1 %361 }
 0x10c   : > { %v354_v27 = vpop.xlane.xlu0 %353  ;;  %v373_v42 = vmul.f32 0.001953125, %v362_v26 }
 0x10d   : > { %v369_v43 = vmul.f32 0.001953125, %v354_v27 }
 0x10e   : > { %v419_v53 = vrot.slane %v373_v42, %v393_v38 }
 0x10f   : > { %v364_v31 = vpop.xlane.xlu1 %363  ;;  %v394_v54 = vrot.slane %v369_v43, %v393_v38 }
 0x110   : > { %v356_v32 = vpop.xlane.xlu0 %355  ;;  %v374_v35 = vmul.f32 0.001953125, %v364_v31 }
 0x111   : > { %v370_v36 = vmul.f32 0.001953125, %v356_v32 }
 0x112   : > { %v423_v46 = vrot.slane %v374_v35, %v398_v34 }
 0x113   : > { %v366_v40 = vpop.xlane.xlu1 %365  ;;  %v399_v47 = vrot.slane %v370_v36, %v398_v34 }
 0x114   : > { %v358_v41 = vpop.xlane.xlu0 %357  ;;  %v375_v44 = vmul.f32 0.001953125, %v366_v40  ;;  %v424_v57 = vsel %vm400_vm1, %v423_v46, %v419_v53 }
 0x115   : > { %v371_v45 = vmul.f32 0.001953125, %v358_v41  ;;  %v401_v58 = vsel %vm400_vm1, %v399_v47, %v394_v54 }
 0x116   : > { %v428_v49 = vrot.slane %v375_v44, %v405_v39 }
 0x117   : > { %v406_v50 = vrot.slane %v371_v45, %v405_v39  ;;  %v368_v51 = vpop.xlane.xlu1 %367 }
 0x118   : > { %v360_v52 = vpop.xlane.xlu0 %359  ;;  %v376_v55 = vmul.f32 0.001953125, %v368_v51  ;;  %v429_v61 = vsel %vm407_vm2, %v428_v49, %v424_v57 }
 0x119   : > { %v372_v56 = vmul.f32 0.001953125, %v360_v52  ;;  %v408_v62 = vsel %vm407_vm2, %v406_v50, %v401_v58 }
 0x11a   : > { %v433_v59 = vrot.slane %v376_v55, %v412_v48 }
 0x11b   : > { %v413_v60 = vrot.slane %v372_v56, %v412_v48 }
 0x11c   : > { %v434_v0 = vsel %vm414_vm3, %v433_v59, %v429_v61 }
 0x11d   : > { %v415_v63 = vsel %vm414_vm3, %v413_v60, %v408_v62 }
 0x11e   : > { %v436_v1 = vsel %vm435_vm4, %v434_v0, %v415_v63 }
 0x11f   : > { %948 = vmatmul.mubr.msk.f32.vlgmr.msra.gmra.mrb[0].mxu0 %vm437_vm5, %v436_v1 }
 0x1f2   : > { %v506_v3 = vpop.f32.mrb[0].mxu0 }
 0x1f3   : > { %v510_v4 = vmax.f32 %v506_v3, 0.0  ;;  %v949_v5 = vpop.f32.mrb[1].mxu0 }
 0x1f5   : > { %953 = vmatmul.mubr.msk.f32.vlgmr.msra.gmra.mrb[0].mxu1 %vm512_vm7, %v510_v4 }
 0x2c8   : > { %v586_v6 = vpop.f32.mrb[0].mxu1 }
 0x2c9   : > { %v924_v7 = vmul.f32 -1.442695, %v586_v6  ;;  %v954_v8 = vpop.f32.mrb[1].mxu1 }
 0x2cb   : > { %1039 = vpow2.f32 %v924_v7 }
 0x2d5   : > { %v1040_v9 = vpop.eup %1039 }
 0x2d6   : > { %v593_v10 = vadd.f32 1.0, %v1040_v9 }
 0x2d8   : > { %1041 = vrcp.f32 %v593_v10 }
 0x2e2   : > { %v1042_v12 = vpop.eup %1041 }
 0x2e3   : > { %v599_v13 = vrot.slane %v1042_v12, %v598_v11  ;;  %v618_v15 = vrot.slane %v1042_v12, %v617_v14 }
 0x2e5   : > { %605 = vbcast.lane.b32.xlu1 %v599_v13, 264  ;;  %601 = vbcast.lane.b32.xlu0 %v599_v13, 256 }
 0x2e9   : > { %609 = vbcast.lane.b32.xlu1 %v599_v13, 272  ;;  %620 = vbcast.lane.b32.xlu0 %v618_v15, 256 }
 0x2ed   : > { %613 = vbcast.lane.b32.xlu1 %v599_v13, 280  ;;  %628 = vbcast.lane.b32.xlu0 %v618_v15, 272 }
 0x2f1   : > { %624 = vbcast.lane.b32.xlu1 %v618_v15, 264 }
 0x2f5   : > { %632 = vbcast.lane.b32.xlu1 %v618_v15, 280 }
 0x357   : > { %v606_v16 = vpop.permute.xlu1 %605  ;;  %v602_v17 = vpop.permute.xlu0 %601 }
 0x358   : > { %636 = vst.msk [vmem:[#allocation3 + $0x8] sm:$0xff] %vm634_vm8, %v606_v16  ;;  %635 = vst.msk [vmem:[#allocation3] sm:$0xff] %vm634_vm8, %v602_v17 }
 0x35b   : > { %v610_v18 = vpop.permute.xlu1 %609  ;;  %v621_v19 = vpop.permute.xlu0 %620 }
 0x35c   : > { %637 = vst.msk [vmem:[#allocation3 + $0x10] sm:$0xff] %vm634_vm8, %v610_v18  ;;  %639 = vst.msk [vmem:[#allocation3 + $0x20] sm:$0xff] %vm634_vm8, %v621_v19 }
 0x35f   : > { %v614_v20 = vpop.permute.xlu1 %613  ;;  %v629_v21 = vpop.permute.xlu0 %628 }
 0x360   : > { %638 = vst.msk [vmem:[#allocation3 + $0x18] sm:$0xff] %vm634_vm8, %v614_v20  ;;  %641 = vst.msk [vmem:[#allocation3 + $0x30] sm:$0xff] %vm634_vm8, %v629_v21 }
 0x363   : > { %v625_v22 = vpop.permute.xlu1 %624 }
 0x364   : > { %640 = vst.msk [vmem:[#allocation3 + $0x28] sm:$0xff] %vm634_vm8, %v625_v22 }
 0x367   : > { %v633_v23 = vpop.permute.xlu1 %632 }
 0x368   : > { %642 = vst.msk [vmem:[#allocation3 + $0x38] sm:$0xff] %vm634_vm8, %v633_v23 }
 0x369 PF: > { %p925_p9 = scmp.ne.s32.totalorder %s1181_s12, 1 }
 0x36a   : > { %v680_v24 = vld [vmem:[#allocation3 + $0x10] sm:$0xff] (!%p925_p9)  ;;  %v678_v25 = vld [vmem:[#allocation3] sm:$0xff] (!%p925_p9)  ;;  %v1202_v26 = vmov (!%p925_p9), 0   ;;  %v681_v27 = vld [vmem:[#allocation3 + $0x18] sm:$0xff] (!%p925_p9) }
 0x36b   : > { %645 = sbr.rel (%p925_p9) target bundleno = 1022 (0x3fe), region = 60  ;;  %1044 = vset.pattern.permute.xlu1 (!%p925_p9), %v1202_v26  ;;  %1043 = vset.pattern.permute.xlu0 (!%p925_p9), %v1202_v26  ;;  %v679_v28 = vld [vmem:[#allocation3 + $0x8] sm:$0xff] (!%p925_p9)  ;;  %v682_v30 = vld [vmem:[#allocation3 + $0x20] sm:$0xff] (!%p925_p9)  ;;  %v684_v32 = vld [vmem:[#allocation3 + $0x30] sm:$0xff] (!%p925_p9) }
 0x36c   : > { %698 = vperm.xlu1 (!%p925_p9), %1044, %v680_v24   ;;  %688 = vperm.xlu0 (!%p925_p9), %1043, %v678_v25   ;;  %v683_v29 = vld [vmem:[#allocation3 + $0x28] sm:$0xff] (!%p925_p9)  ;;  %v654_v33 = vld [vmem:[#allocation4 + $0x40] sm:$0xff] (!%p925_p9)  ;;  %v656_v35 = vld [vmem:[#allocation4 + $0x50] sm:$0xff] (!%p925_p9) }
 0x36d   : > { %v655_v34 = vld [vmem:[#allocation4 + $0x48] sm:$0xff] (!%p925_p9)  ;;  %v657_v36 = vld [vmem:[#allocation4 + $0x58] sm:$0xff] (!%p925_p9)  ;;  %v646_v37 = vld [vmem:[#allocation4] sm:$0xff] (!%p925_p9) }
 0x36e   : > { %v647_v38 = vld [vmem:[#allocation4 + $0x8] sm:$0xff] (!%p925_p9)  ;;  %v648_v39 = vld [vmem:[#allocation4 + $0x10] sm:$0xff] (!%p925_p9)  ;;  %v649_v40 = vld [vmem:[#allocation4 + $0x18] sm:$0xff] (!%p925_p9) }
 0x36f   : > { %v685_v31 = vld [vmem:[#allocation3 + $0x38] sm:$0xff] (!%p925_p9)  ;;  %v658_v47 = vld [vmem:[#allocation4 + $0x60] sm:$0xff] (!%p925_p9)  ;;  %v659_v48 = vld [vmem:[#allocation4 + $0x68] sm:$0xff] (!%p925_p9) }
 0x370   : > { %703 = vperm.xlu1 (!%p925_p9), %1044, %v681_v27   ;;  %693 = vperm.xlu0 (!%p925_p9), %1043, %v679_v28   ;;  %v660_v53 = vld [vmem:[#allocation4 + $0x70] sm:$0xff] (!%p925_p9)  ;;  %v661_v54 = vld [vmem:[#allocation4 + $0x78] sm:$0xff] (!%p925_p9)  ;;  %v650_v55 = vld [vmem:[#allocation4 + $0x20] sm:$0xff] (!%p925_p9) }
 0x371   : > { %v651_v56 = vld [vmem:[#allocation4 + $0x28] sm:$0xff] (!%p925_p9)  ;;  %v652_v57 = vld [vmem:[#allocation4 + $0x30] sm:$0xff] (!%p925_p9)  ;;  %v653_v58 = vld [vmem:[#allocation4 + $0x38] sm:$0xff] (!%p925_p9) }
 0x372   : > { %v666_v1 = vld [vmem:[#allocation4 + $0xa0] sm:$0xff]  ;;  %v667_v2 = vld [vmem:[#allocation4 + $0xa8] sm:$0xff]  ;;  %v668_v7 = vld [vmem:[#allocation4 + $0xb0] sm:$0xff] }
 0x373   : > { %v669_v8 = vld [vmem:[#allocation4 + $0xb8] sm:$0xff]  ;;  %v662_v9 = vld [vmem:[#allocation4 + $0x80] sm:$0xff]  ;;  %v663_v10 = vld [vmem:[#allocation4 + $0x88] sm:$0xff] }
 0x374   : > { %713 = vperm.xlu1 %1044, %v683_v29   ;;  %708 = vperm.xlu0 %1043, %v682_v30   ;;  %v664_v11 = vld [vmem:[#allocation4 + $0x90] sm:$0xff]  ;;  %v665_v12 = vld [vmem:[#allocation4 + $0x98] sm:$0xff]  ;;  %v674_v19 = vld [vmem:[#allocation4 + $0xe0] sm:$0xff] }
 0x375   : > { %v675_v20 = vld [vmem:[#allocation4 + $0xe8] sm:$0xff]  ;;  %v676_v25 = vld [vmem:[#allocation4 + $0xf0] sm:$0xff]  ;;  %v677_v26 = vld [vmem:[#allocation4 + $0xf8] sm:$0xff] }
 0x376   : > { %v670_v27 = vld [vmem:[#allocation4 + $0xc0] sm:$0xff]  ;;  %v671_v28 = vld [vmem:[#allocation4 + $0xc8] sm:$0xff]  ;;  %v672_v29 = vld [vmem:[#allocation4 + $0xd0] sm:$0xff] }
 0x377   : > { %v673_v30 = vld [vmem:[#allocation4 + $0xd8] sm:$0xff] }
 0x378   : > { %723 = vperm.xlu1 %1044, %v685_v31   ;;  %718 = vperm.xlu0 %1043, %v684_v32  }
 0x3eb   : > { %v699_v41 = vpop.permute.xlu1 %698  ;;  %v689_v42 = vpop.permute.xlu0 %688 }
 0x3ec   : > { %v734_v43 = vmul.f32 %v699_v41, %v654_v33  ;;  %v735_v44 = vmul.f32 %v699_v41, %v655_v34  ;;  %v736_v45 = vmul.f32 %v699_v41, %v656_v35  ;;  %v737_v46 = vmul.f32 %v699_v41, %v657_v36 }
 0x3ed   : > { %v726_v49 = vmul.f32 %v689_v42, %v646_v37  ;;  %v727_v50 = vmul.f32 %v689_v42, %v647_v38  ;;  %v728_v51 = vmul.f32 %v689_v42, %v648_v39  ;;  %v729_v52 = vmul.f32 %v689_v42, %v649_v40 }
 0x3ee   : > { %766 = vst [vmem:[#allocation10 + $0x40] sm:$0xff] %v734_v43  ;;  %767 = vst [vmem:[#allocation10 + $0x48] sm:$0xff] %v735_v44 }
 0x3ef   : > { %768 = vst [vmem:[#allocation10 + $0x50] sm:$0xff] %v736_v45  ;;  %769 = vst [vmem:[#allocation10 + $0x58] sm:$0xff] %v737_v46  ;;  %v704_v59 = vpop.permute.xlu1 %703  ;;  %v694_v60 = vpop.permute.xlu0 %693 }
 0x3f0   : > { %758 = vst [vmem:[#allocation10] sm:$0xff] %v726_v49  ;;  %759 = vst [vmem:[#allocation10 + $0x8] sm:$0xff] %v727_v50  ;;  %v738_v61 = vmul.f32 %v704_v59, %v658_v47  ;;  %v739_v62 = vmul.f32 %v704_v59, %v659_v48  ;;  %v740_v63 = vmul.f32 %v704_v59, %v660_v53 }
 0x3f1   : > { %760 = vst [vmem:[#allocation10 + $0x10] sm:$0xff] %v728_v51  ;;  %761 = vst [vmem:[#allocation10 + $0x18] sm:$0xff] %v729_v52  ;;  %v741_v0 = vmul.f32 %v704_v59, %v661_v54  ;;  %v730_v3 = vmul.f32 %v694_v60, %v650_v55  ;;  %v731_v4 = vmul.f32 %v694_v60, %v651_v56 }
 0x3f2   : > { %v732_v5 = vmul.f32 %v694_v60, %v652_v57  ;;  %v733_v6 = vmul.f32 %v694_v60, %v653_v58  ;;  %770 = vst [vmem:[#allocation10 + $0x60] sm:$0xff] %v738_v61  ;;  %771 = vst [vmem:[#allocation10 + $0x68] sm:$0xff] %v739_v62 }
 0x3f3   : > { %772 = vst [vmem:[#allocation10 + $0x70] sm:$0xff] %v740_v63  ;;  %773 = vst [vmem:[#allocation10 + $0x78] sm:$0xff] %v741_v0  ;;  %v714_v13 = vpop.permute.xlu1 %713  ;;  %v709_v14 = vpop.permute.xlu0 %708 }
 0x3f4   : > { %762 = vst [vmem:[#allocation10 + $0x20] sm:$0xff] %v730_v3  ;;  %763 = vst [vmem:[#allocation10 + $0x28] sm:$0xff] %v731_v4  ;;  %v746_v15 = vmul.f32 %v714_v13, %v666_v1  ;;  %v747_v16 = vmul.f32 %v714_v13, %v667_v2  ;;  %v748_v17 = vmul.f32 %v714_v13, %v668_v7 }
 0x3f5   : > { %764 = vst [vmem:[#allocation10 + $0x30] sm:$0xff] %v732_v5  ;;  %765 = vst [vmem:[#allocation10 + $0x38] sm:$0xff] %v733_v6  ;;  %v749_v18 = vmul.f32 %v714_v13, %v669_v8  ;;  %v742_v21 = vmul.f32 %v709_v14, %v662_v9  ;;  %v743_v22 = vmul.f32 %v709_v14, %v663_v10 }
 0x3f6   : > { %v744_v23 = vmul.f32 %v709_v14, %v664_v11  ;;  %v745_v24 = vmul.f32 %v709_v14, %v665_v12  ;;  %778 = vst [vmem:[#allocation10 + $0xa0] sm:$0xff] %v746_v15  ;;  %779 = vst [vmem:[#allocation10 + $0xa8] sm:$0xff] %v747_v16 }
 0x3f7   : > { %780 = vst [vmem:[#allocation10 + $0xb0] sm:$0xff] %v748_v17  ;;  %781 = vst [vmem:[#allocation10 + $0xb8] sm:$0xff] %v749_v18  ;;  %v724_v31 = vpop.permute.xlu1 %723  ;;  %v719_v32 = vpop.permute.xlu0 %718 }
 0x3f8   : > { %774 = vst [vmem:[#allocation10 + $0x80] sm:$0xff] %v742_v21  ;;  %775 = vst [vmem:[#allocation10 + $0x88] sm:$0xff] %v743_v22  ;;  %v754_v33 = vmul.f32 %v724_v31, %v674_v19  ;;  %v755_v34 = vmul.f32 %v724_v31, %v675_v20  ;;  %v756_v35 = vmul.f32 %v724_v31, %v676_v25 }
 0x3f9   : > { %776 = vst [vmem:[#allocation10 + $0x90] sm:$0xff] %v744_v23  ;;  %777 = vst [vmem:[#allocation10 + $0x98] sm:$0xff] %v745_v24  ;;  %v757_v36 = vmul.f32 %v724_v31, %v677_v26  ;;  %v750_v37 = vmul.f32 %v719_v32, %v670_v27  ;;  %v751_v38 = vmul.f32 %v719_v32, %v671_v28 }
 0x3fa   : > { %v752_v39 = vmul.f32 %v719_v32, %v672_v29  ;;  %v753_v40 = vmul.f32 %v719_v32, %v673_v30  ;;  %786 = vst [vmem:[#allocation10 + $0xe0] sm:$0xff] %v754_v33  ;;  %787 = vst [vmem:[#allocation10 + $0xe8] sm:$0xff] %v755_v34 }
 0x3fb   : > { %788 = vst [vmem:[#allocation10 + $0xf0] sm:$0xff] %v756_v35  ;;  %789 = vst [vmem:[#allocation10 + $0xf8] sm:$0xff] %v757_v36 }
 0x3fc   : > { %782 = vst [vmem:[#allocation10 + $0xc0] sm:$0xff] %v750_v37  ;;  %783 = vst [vmem:[#allocation10 + $0xc8] sm:$0xff] %v751_v38 }
 0x3fd   : > { %784 = vst [vmem:[#allocation10 + $0xd0] sm:$0xff] %v752_v39  ;;  %785 = vst [vmem:[#allocation10 + $0xd8] sm:$0xff] %v753_v40 }
 0x3fe PF: > { %p1366_p10 = scmp.eq.s32.totalorder %s908_s17, 1  ;;  %s1203_s19 = smov [#allocation10]  }
 0x3ff   : > { %s808_s20 = sshll.u32 %s1203_s19, 4  ;;  %s809_s20 = int_to_ptr.vmem [resolvable:$true] %s808_s20 }
 0x400   : > { %s1129_s21 = scalar_lea.vmem %s809_s20, 4096  ;;  %s1135_s29 = scalar_lea.vmem %s809_s20, 8192 }
 0x401   : > { %p1130_p11 = scmp.ne.s32.totalorder %s809_s20, %s1129_s21  ;;  %p1136_p0 = scmp.lt.s32.totalorder %s809_s20, %s809_s20 }
 0x402   : > { %p1137_p1 = scmp.lt.s32.totalorder %s1135_s29, %s1129_s21 }
 0x403   : > { %p1131_p12 = pnand %p1130_p11, %p1366_p10 }
 0x404   : > { %p1138_p4 = por %p1137_p1, %p1136_p0 }
 0x405   : > { %p1132_p13 = pneg %p1131_p12 }
 0x407   : > { %p1139_p7 = pnand %p1138_p4, %p1132_p13 }
 0x409   : > { %1142 = shalt.err (!%p1139_p7)
}
 0x40a   : > { %s1143_s23 = scalar_lea.hbm %s1403_s3, 4096 }
 0x40b   : > { %p1144_p2 = scmp.ne.s32.totalorder %s1403_s3, %s1143_s23  ;;  %p1149_p5 = scmp.lt.u32.totalorder %s1143_s23, %s1403_s3 }
 0x40d   : > { %p1145_p3 = pnand %p1144_p2, %p1366_p10 }
 0x40f   : > { %p1146_p8 = pneg %p1145_p3 }
 0x411   : > { %p1151_p6 = pnand %p1149_p5, %p1146_p8 }
 0x413   : > { %1154 = shalt.err (!%p1151_p6)
}
 0x414   : > { %s1204_s8 = smov 512   ;;  %s1205_s9 = smov 32  }
 0x415   : > { %974 = dma.vmem_to_hbm [thread:$0]  (%p1366_p10), %s809_s20, 4096, %s1403_s3, [#allocation6], %s1204_s8, %s1204_s8, %s1205_s9  }
 0x416 PF: > { %p998_p9 = scmp.ge.s32.totalorder %s1189_s14, 2  ;;  %p999_p11 = scmp.eq.s32.totalorder %s909_s18, 1 }
 0x418   : > { %p988_p12 = pnand %p999_p11, %p998_p9 }
 0x41a   : > { %1176 = dma.done.wait (!%p988_p12), [#allocation6], 4096  }
 0x41b   : > { %1178 = vsyncadd (!%p988_p12), [#allocation6], 4294963200  ;;  %s18_s14 = sadd.s32 1, %s1189_s14   ;;  %s1416_s12 = smov %s1185_s13 }
 0x41c   : > { %p15_p13 = scmp.ge.s32.totalorder %s18_s14, 4   ;;  %s1417_s13 = smov %s1419_s22 }
 0x41e   :  { %17 = sbr.rel (!%p15_p13) target bundleno = 5 (0x5), region = 97 }
 0x425   :  { %829 = vsyncpa [#allocation5], 1 }
 0x426   :  { %831 = vsyncpa [#allocation5 + $0x1], 1 }
 0x427   :  { %832 = vsyncpa [#allocation8], 1 }
 0x428   :  { %833 = vsyncpa [#allocation6], 1 }
 0x429   :  { %835 = vsyncpa [#allocation6 + $0x1], 1 }

</bundles_post_ra>
